<compile_context>
chip_gen: v7x
topology: tpu7x:2x2x1
jax: 0.10.0
libtpu: 0.0.40
codegen_flags: <defaults>
</compile_context>

<pallas_src>
import functools

import jax
import jax.numpy as jnp
from jax.experimental import pallas as pl
from jax.experimental.pallas import tpu as pltpu


# ----------------------------- Pallas kernel --------------------------------

def _residual_block_kernel(x_ref, wband_ref, bias_ref, o_ref, *, H, WC):
    """Fused ResidualBlock (4 convs + ReLUs + residual add) for one image.

    x_ref:     (H, W*C)            activation slab of one image (f32)
    wband_ref: (4, W*C, 3*W*C)     banded weights, taps concatenated (bf16)
    bias_ref:  (4, 1, W*C)         per-conv bias, tiled across W (f32)
    o_ref:     (H, W*C)            output slab
    """
    # Height "SAME" padding: contributions crossing the image's top/bottom
    # edge are zeroed.  Narrow (H, 1) masks, broadcast inside the selects.
    row = jax.lax.broadcasted_iota(jnp.int32, (H, 1), 0)
    top = row == 0
    bot = row == (H - 1)

    def conv_relu(act, idx):
        # Single MXU matmul per conv: (H, WC) x (WC, 3*WC) -> (H, 3*WC) f32.
        p = jnp.dot(act.astype(jnp.bfloat16), wband_ref[idx],
                    preferred_element_type=jnp.float32)
        p0 = p[:, :WC]            # kh = 0 tap (needs row above)
        p1 = p[:, WC:2 * WC]      # kh = 1 tap (same row)
        p2 = p[:, 2 * WC:]        # kh = 2 tap (needs row below)
        # out[r] = p0[r-1] + p1[r] + p2[r+1]; edge-crossing terms zeroed.
        from_above = jnp.where(top, 0.0, pltpu.roll(p0, shift=1, axis=0))
        from_below = jnp.where(bot, 0.0, pltpu.roll(p2, shift=H - 1, axis=0))
        acc = from_above + p1 + from_below + bias_ref[idx]
        return jnp.maximum(acc, 0.0)

    x = x_ref[...]
    y = conv_relu(x, 0)          # relu(conv1(x))
    x1 = conv_relu(y, 1)         # relu(conv2(.))  -> saved skip
    y = conv_relu(x1, 2)         # relu(conv3(.))
    y = conv_relu(y, 3)          # relu(conv4(.))
    o_ref[...] = (x + x1 + y).astype(o_ref.dtype)   # fused residual add


# ----------------------------- weight prep (one-time) ------------------------

def _banded_weights(w, W):
    """Lower an HWIO 3x3 conv weight (3, 3, C, C) to 3 banded GEMM matrices.

    band[kh][w_in*C + ci, w_out*C + co] = w[kh, kw, ci, co] with
    w_in = w_out + kw - 1; out-of-range width taps are absent, which realizes
    the width-direction "SAME" zero padding.  Returns (3, W*C, W*C).
    """
    C = w.shape[2]
    eyes = jnp.stack(
        [jnp.eye(W, W, k=1 - kw, dtype=w.dtype) for kw in range(3)])  # (3,W,W)
    band = jnp.einsum("dpw,hdio->hpiwo", eyes, w)   # (kh, w_in, ci, w_out, co)
    return band.reshape(3, W * C, W * C)


def prepare_params(params, W):
    """One-time prep, hoisted out of the per-call forward.

    Returns:
      wband: (4, W*C, 3*W*C) bf16 — per conv, the 3 height-tap banded matrices
             concatenated along the output dim (kh = 0, 1, 2 lane blocks).
      bias:  (4, 1, W*C)     f32  — per conv, bias tiled across W.
    """
    C = params["conv1"][0].shape[2]
    WC = W * C
    wband, bias = [], []
    for i in range(1, 5):
        w, b = params[f"conv{i}"]
        band = _banded_weights(w, W)                          # (3, WC, WC)
        wband.append(jnp.concatenate(list(band), axis=-1))    # (WC, 3*WC)
        bias.append(jnp.tile(b, W))                           # (WC,)
    wband = jnp.stack(wband).astype(jnp.bfloat16)             # (4, WC, 3*WC)
    bias = jnp.stack(bias).reshape(4, 1, WC)                  # (4, 1, WC)
    return wband, bias


# ----------------------------- forward ---------------------------------------

@jax.jit
def residual_block_forward(wband, bias, x):
    """x: (N, H, W, C) NHWC float32. Returns (N, H, W, C)."""
    N, H, W, C = x.shape
    WC = W * C

    kernel = functools.partial(_residual_block_kernel, H=H, WC=WC)
    out = pl.pallas_call(
        kernel,
        out_shape=jax.ShapeDtypeStruct((N * H, WC), x.dtype),
        grid=(N,),
        in_specs=[
            pl.BlockSpec((H, WC), lambda n: (n, 0)),           # one image/step
            pl.BlockSpec((4, WC, 3 * WC), lambda n: (0, 0, 0)),  # resident
            pl.BlockSpec((4, 1, WC), lambda n: (0, 0, 0)),       # resident
        ],
        out_specs=pl.BlockSpec((H, WC), lambda n: (n, 0)),
        compiler_params=pltpu.CompilerParams(
            dimension_semantics=("parallel",)),   # 2 TCs on v7x
    )(x.reshape(N * H, WC), wband, bias)
    return out.reshape(N, H, W, C)


# ----------------------------- parameters ------------------------------------

def init_params(key, channels):
    """Synthetic parameters: HWIO 3x3 weights + small biases, 4 convs."""
    def conv_params(k):
        kw, kb = jax.random.split(k)
        w = jax.random.normal(kw, (3, 3, channels, channels), jnp.float32) * 0.1
        b = jax.random.normal(kb, (channels,), jnp.float32) * 0.01
        return w, b

    keys = jax.random.split(key, 4)
    return {f"conv{i + 1}": conv_params(keys[i]) for i in range(4)}


# ----------------------------- pure-JAX reference ----------------------------

def _conv_ref(x, w, b):
    y = jax.lax.conv_general_dilated(
        x, w, window_strides=(1, 1), padding="SAME",
        dimension_numbers=("NHWC", "HWIO", "NHWC"))
    return y + b


def residual_block_ref(params, x):
    relu = lambda t: jnp.maximum(t, 0.0)
    y = relu(_conv_ref(x, *params["conv1"]))
    y = relu(_conv_ref(y, *params["conv2"]))
    x1 = y
    y = relu(_conv_ref(y, *params["conv3"]))
    y = relu(_conv_ref(y, *params["conv4"]))
    return x + x1 + y


# ----------------------------- main -------------------------------------------

if __name__ == "__main__":
    key = jax.random.PRNGKey(0)
    k_x, k_p = jax.random.split(key)

    # NHWC input; PyTorch NCHW equivalent would be (2, 8, 16, 16).
    # channels=8 so that W*C = 128 (exactly one lane-dense vreg width).
    N, H, W, C = 2, 16, 16, 8
    x = jax.random.normal(k_x, (N, H, W, C), jnp.float32)
    params = init_params(k_p, C)

    wband, bias = prepare_params(params, W)        # one-time weight prep
    out = residual_block_forward(wband, bias, x)
    out = jax.block_until_ready(out)

    ref = residual_block_ref(params, x)
    assert out.shape == (N, H, W, C)
    # Tolerance loosened vs. the f32 reference because the conv weights /
    # matmul operands run in bf16 (f32 accumulation); observed error is far
    # below this bound at these scales.
    assert jnp.allclose(out, ref, atol=1e-1, rtol=1e-1), "mismatch vs reference"

    print("KERNEL_OK")
</pallas_src>

<mosaic_0001>
module attributes {stable_mosaic.version = 11 : i64} {
  func.func @_residual_block_kernel(%arg0: i32, %arg1: memref<16x128xf32, #tpu.memory_space<vmem>>, %arg2: memref<4x128x384xbf16, #tpu.memory_space<vmem>>, %arg3: memref<4x1x128xf32, #tpu.memory_space<vmem>>, %arg4: memref<16x128xf32, #tpu.memory_space<vmem>>) attributes {dimension_semantics = [#tpu.dimension_semantics<parallel>], iteration_bounds = array<i64: 2>, scalar_prefetch = 0 : i64, scratch_operands = 0 : i64, tpu.core_type = #tpu.core_type<tc>, window_params = [{transform_indices = @transform_0, window_bounds = array<i64: 16, 128>}, {pipeline_mode = #tpu.pipeline_mode<synchronous>, transform_indices = @transform_1, window_bounds = array<i64: 4, 128, 384>}, {pipeline_mode = #tpu.pipeline_mode<synchronous>, transform_indices = @transform_2, window_bounds = array<i64: 4, 1, 128>}, {transform_indices = @transform_3, window_bounds = array<i64: 16, 128>}]} {
    %0 = tpu.iota {dimensions = array<i32: 0>} : vector<16x1xi32>
    %c0_i32 = arith.constant 0 : i32
    %1 = vector.broadcast %c0_i32 : i32 to vector<16x1xi32>
    %2 = arith.cmpi eq, %0, %1 : vector<16x1xi32>
    %c15_i32 = arith.constant 15 : i32
    %3 = vector.broadcast %c15_i32 : i32 to vector<16x1xi32>
    %4 = arith.cmpi eq, %0, %3 : vector<16x1xi32>
    %c0 = arith.constant 0 : index
    %c0_0 = arith.constant 0 : index
    %5 = vector.load %arg1[%c0, %c0_0] : memref<16x128xf32, #tpu.memory_space<vmem>>, vector<16x128xf32>
    %6 = arith.truncf %5 : vector<16x128xf32> to vector<16x128xbf16>
    %c0_1 = arith.constant 0 : index
    %c0_2 = arith.constant 0 : index
    %c0_3 = arith.constant 0 : index
    %7 = vector.load %arg2[%c0_1, %c0_2, %c0_3] : memref<4x128x384xbf16, #tpu.memory_space<vmem>>, vector<1x128x384xbf16>
    %8 = vector.shape_cast %7 : vector<1x128x384xbf16> to vector<128x384xbf16>
    %cst = arith.constant dense<0.000000e+00> : vector<16x384xf32>
    %9 = tpu.matmul %6, %8, %cst {dimension_numbers = #tpu.dot_dimension_numbers<[1], [0], [0], [1], [0, 0, 1, 1], [], []>} : vector<16x128xbf16>, vector<128x384xbf16>, vector<16x384xf32> -> vector<16x384xf32>
    %10 = vector.extract_strided_slice %9 {offsets = [0, 0], sizes = [16, 128], strides = [1, 1]} : vector<16x384xf32> to vector<16x128xf32>
    %11 = vector.extract_strided_slice %9 {offsets = [0, 128], sizes = [16, 128], strides = [1, 1]} : vector<16x384xf32> to vector<16x128xf32>
    %12 = vector.extract_strided_slice %9 {offsets = [0, 256], sizes = [16, 128], strides = [1, 1]} : vector<16x384xf32> to vector<16x128xf32>
    %c1_i32 = arith.constant 1 : i32
    %13 = tpu.dynamic_rotate %10 by %c1_i32 dim 0 : vector<16x128xf32>, i32 -> vector<16x128xf32>
    %cst_4 = arith.constant 0.000000e+00 : f32
    %14 = vector.shape_cast %2 : vector<16x1xi1> to vector<16x1xi1>
    %15 = vector.broadcast %14 : vector<16x1xi1> to vector<16x128xi1>
    %16 = vector.broadcast %cst_4 : f32 to vector<16x128xf32>
    %17 = arith.select %15, %16, %13 : vector<16x128xi1>, vector<16x128xf32>
    %c15_i32_5 = arith.constant 15 : i32
    %18 = tpu.dynamic_rotate %12 by %c15_i32_5 dim 0 : vector<16x128xf32>, i32 -> vector<16x128xf32>
    %cst_6 = arith.constant 0.000000e+00 : f32
    %19 = vector.shape_cast %4 : vector<16x1xi1> to vector<16x1xi1>
    %20 = vector.broadcast %19 : vector<16x1xi1> to vector<16x128xi1>
    %21 = vector.broadcast %cst_6 : f32 to vector<16x128xf32>
    %22 = arith.select %20, %21, %18 : vector<16x128xi1>, vector<16x128xf32>
    %23 = arith.addf %17, %11 : vector<16x128xf32>
    %24 = arith.addf %23, %22 : vector<16x128xf32>
    %c0_7 = arith.constant 0 : index
    %c0_8 = arith.constant 0 : index
    %c0_9 = arith.constant 0 : index
    %25 = vector.load %arg3[%c0_7, %c0_8, %c0_9] : memref<4x1x128xf32, #tpu.memory_space<vmem>>, vector<1x1x128xf32>
    %26 = vector.shape_cast %25 : vector<1x1x128xf32> to vector<1x128xf32>
    %27 = vector.broadcast %26 : vector<1x128xf32> to vector<16x128xf32>
    %28 = arith.addf %24, %27 : vector<16x128xf32>
    %cst_10 = arith.constant 0.000000e+00 : f32
    %29 = vector.broadcast %cst_10 : f32 to vector<16x128xf32>
    %30 = arith.maximumf %28, %29 : vector<16x128xf32>
    %31 = arith.truncf %30 : vector<16x128xf32> to vector<16x128xbf16>
    %c1 = arith.constant 1 : index
    %c0_11 = arith.constant 0 : index
    %c0_12 = arith.constant 0 : index
    %32 = vector.load %arg2[%c1, %c0_11, %c0_12] : memref<4x128x384xbf16, #tpu.memory_space<vmem>>, vector<1x128x384xbf16>
    %33 = vector.shape_cast %32 : vector<1x128x384xbf16> to vector<128x384xbf16>
    %cst_13 = arith.constant dense<0.000000e+00> : vector<16x384xf32>
    %34 = tpu.matmul %31, %33, %cst_13 {dimension_numbers = #tpu.dot_dimension_numbers<[1], [0], [0], [1], [0, 0, 1, 1], [], []>} : vector<16x128xbf16>, vector<128x384xbf16>, vector<16x384xf32> -> vector<16x384xf32>
    %35 = vector.extract_strided_slice %34 {offsets = [0, 0], sizes = [16, 128], strides = [1, 1]} : vector<16x384xf32> to vector<16x128xf32>
    %36 = vector.extract_strided_slice %34 {offsets = [0, 128], sizes = [16, 128], strides = [1, 1]} : vector<16x384xf32> to vector<16x128xf32>
    %37 = vector.extract_strided_slice %34 {offsets = [0, 256], sizes = [16, 128], strides = [1, 1]} : vector<16x384xf32> to vector<16x128xf32>
    %c1_i32_14 = arith.constant 1 : i32
    %38 = tpu.dynamic_rotate %35 by %c1_i32_14 dim 0 : vector<16x128xf32>, i32 -> vector<16x128xf32>
    %cst_15 = arith.constant 0.000000e+00 : f32
    %39 = vector.shape_cast %2 : vector<16x1xi1> to vector<16x1xi1>
    %40 = vector.broadcast %39 : vector<16x1xi1> to vector<16x128xi1>
    %41 = vector.broadcast %cst_15 : f32 to vector<16x128xf32>
    %42 = arith.select %40, %41, %38 : vector<16x128xi1>, vector<16x128xf32>
    %c15_i32_16 = arith.constant 15 : i32
    %43 = tpu.dynamic_rotate %37 by %c15_i32_16 dim 0 : vector<16x128xf32>, i32 -> vector<16x128xf32>
    %cst_17 = arith.constant 0.000000e+00 : f32
    %44 = vector.shape_cast %4 : vector<16x1xi1> to vector<16x1xi1>
    %45 = vector.broadcast %44 : vector<16x1xi1> to vector<16x128xi1>
    %46 = vector.broadcast %cst_17 : f32 to vector<16x128xf32>
    %47 = arith.select %45, %46, %43 : vector<16x128xi1>, vector<16x128xf32>
    %48 = arith.addf %42, %36 : vector<16x128xf32>
    %49 = arith.addf %48, %47 : vector<16x128xf32>
    %c1_18 = arith.constant 1 : index
    %c0_19 = arith.constant 0 : index
    %c0_20 = arith.constant 0 : index
    %50 = vector.load %arg3[%c1_18, %c0_19, %c0_20] : memref<4x1x128xf32, #tpu.memory_space<vmem>>, vector<1x1x128xf32>
    %51 = vector.shape_cast %50 : vector<1x1x128xf32> to vector<1x128xf32>
    %52 = vector.broadcast %51 : vector<1x128xf32> to vector<16x128xf32>
    %53 = arith.addf %49, %52 : vector<16x128xf32>
    %cst_21 = arith.constant 0.000000e+00 : f32
    %54 = vector.broadcast %cst_21 : f32 to vector<16x128xf32>
    %55 = arith.maximumf %53, %54 : vector<16x128xf32>
    %56 = arith.truncf %55 : vector<16x128xf32> to vector<16x128xbf16>
    %c2 = arith.constant 2 : index
    %c0_22 = arith.constant 0 : index
    %c0_23 = arith.constant 0 : index
    %57 = vector.load %arg2[%c2, %c0_22, %c0_23] : memref<4x128x384xbf16, #tpu.memory_space<vmem>>, vector<1x128x384xbf16>
    %58 = vector.shape_cast %57 : vector<1x128x384xbf16> to vector<128x384xbf16>
    %cst_24 = arith.constant dense<0.000000e+00> : vector<16x384xf32>
    %59 = tpu.matmul %56, %58, %cst_24 {dimension_numbers = #tpu.dot_dimension_numbers<[1], [0], [0], [1], [0, 0, 1, 1], [], []>} : vector<16x128xbf16>, vector<128x384xbf16>, vector<16x384xf32> -> vector<16x384xf32>
    %60 = vector.extract_strided_slice %59 {offsets = [0, 0], sizes = [16, 128], strides = [1, 1]} : vector<16x384xf32> to vector<16x128xf32>
    %61 = vector.extract_strided_slice %59 {offsets = [0, 128], sizes = [16, 128], strides = [1, 1]} : vector<16x384xf32> to vector<16x128xf32>
    %62 = vector.extract_strided_slice %59 {offsets = [0, 256], sizes = [16, 128], strides = [1, 1]} : vector<16x384xf32> to vector<16x128xf32>
    %c1_i32_25 = arith.constant 1 : i32
    %63 = tpu.dynamic_rotate %60 by %c1_i32_25 dim 0 : vector<16x128xf32>, i32 -> vector<16x128xf32>
    %cst_26 = arith.constant 0.000000e+00 : f32
    %64 = vector.shape_cast %2 : vector<16x1xi1> to vector<16x1xi1>
    %65 = vector.broadcast %64 : vector<16x1xi1> to vector<16x128xi1>
    %66 = vector.broadcast %cst_26 : f32 to vector<16x128xf32>
    %67 = arith.select %65, %66, %63 : vector<16x128xi1>, vector<16x128xf32>
    %c15_i32_27 = arith.constant 15 : i32
    %68 = tpu.dynamic_rotate %62 by %c15_i32_27 dim 0 : vector<16x128xf32>, i32 -> vector<16x128xf32>
    %cst_28 = arith.constant 0.000000e+00 : f32
    %69 = vector.shape_cast %4 : vector<16x1xi1> to vector<16x1xi1>
    %70 = vector.broadcast %69 : vector<16x1xi1> to vector<16x128xi1>
    %71 = vector.broadcast %cst_28 : f32 to vector<16x128xf32>
    %72 = arith.select %70, %71, %68 : vector<16x128xi1>, vector<16x128xf32>
    %73 = arith.addf %67, %61 : vector<16x128xf32>
    %74 = arith.addf %73, %72 : vector<16x128xf32>
    %c2_29 = arith.constant 2 : index
    %c0_30 = arith.constant 0 : index
    %c0_31 = arith.constant 0 : index
    %75 = vector.load %arg3[%c2_29, %c0_30, %c0_31] : memref<4x1x128xf32, #tpu.memory_space<vmem>>, vector<1x1x128xf32>
    %76 = vector.shape_cast %75 : vector<1x1x128xf32> to vector<1x128xf32>
    %77 = vector.broadcast %76 : vector<1x128xf32> to vector<16x128xf32>
    %78 = arith.addf %74, %77 : vector<16x128xf32>
    %cst_32 = arith.constant 0.000000e+00 : f32
    %79 = vector.broadcast %cst_32 : f32 to vector<16x128xf32>
    %80 = arith.maximumf %78, %79 : vector<16x128xf32>
    %81 = arith.truncf %80 : vector<16x128xf32> to vector<16x128xbf16>
    %c3 = arith.constant 3 : index
    %c0_33 = arith.constant 0 : index
    %c0_34 = arith.constant 0 : index
    %82 = vector.load %arg2[%c3, %c0_33, %c0_34] : memref<4x128x384xbf16, #tpu.memory_space<vmem>>, vector<1x128x384xbf16>
    %83 = vector.shape_cast %82 : vector<1x128x384xbf16> to vector<128x384xbf16>
    %cst_35 = arith.constant dense<0.000000e+00> : vector<16x384xf32>
    %84 = tpu.matmul %81, %83, %cst_35 {dimension_numbers = #tpu.dot_dimension_numbers<[1], [0], [0], [1], [0, 0, 1, 1], [], []>} : vector<16x128xbf16>, vector<128x384xbf16>, vector<16x384xf32> -> vector<16x384xf32>
    %85 = vector.extract_strided_slice %84 {offsets = [0, 0], sizes = [16, 128], strides = [1, 1]} : vector<16x384xf32> to vector<16x128xf32>
    %86 = vector.extract_strided_slice %84 {offsets = [0, 128], sizes = [16, 128], strides = [1, 1]} : vector<16x384xf32> to vector<16x128xf32>
    %87 = vector.extract_strided_slice %84 {offsets = [0, 256], sizes = [16, 128], strides = [1, 1]} : vector<16x384xf32> to vector<16x128xf32>
    %c1_i32_36 = arith.constant 1 : i32
    %88 = tpu.dynamic_rotate %85 by %c1_i32_36 dim 0 : vector<16x128xf32>, i32 -> vector<16x128xf32>
    %cst_37 = arith.constant 0.000000e+00 : f32
    %89 = vector.shape_cast %2 : vector<16x1xi1> to vector<16x1xi1>
    %90 = vector.broadcast %89 : vector<16x1xi1> to vector<16x128xi1>
    %91 = vector.broadcast %cst_37 : f32 to vector<16x128xf32>
    %92 = arith.select %90, %91, %88 : vector<16x128xi1>, vector<16x128xf32>
    %c15_i32_38 = arith.constant 15 : i32
    %93 = tpu.dynamic_rotate %87 by %c15_i32_38 dim 0 : vector<16x128xf32>, i32 -> vector<16x128xf32>
    %cst_39 = arith.constant 0.000000e+00 : f32
    %94 = vector.shape_cast %4 : vector<16x1xi1> to vector<16x1xi1>
    %95 = vector.broadcast %94 : vector<16x1xi1> to vector<16x128xi1>
    %96 = vector.broadcast %cst_39 : f32 to vector<16x128xf32>
    %97 = arith.select %95, %96, %93 : vector<16x128xi1>, vector<16x128xf32>
    %98 = arith.addf %92, %86 : vector<16x128xf32>
    %99 = arith.addf %98, %97 : vector<16x128xf32>
    %c3_40 = arith.constant 3 : index
    %c0_41 = arith.constant 0 : index
    %c0_42 = arith.constant 0 : index
    %100 = vector.load %arg3[%c3_40, %c0_41, %c0_42] : memref<4x1x128xf32, #tpu.memory_space<vmem>>, vector<1x1x128xf32>
    %101 = vector.shape_cast %100 : vector<1x1x128xf32> to vector<1x128xf32>
    %102 = vector.broadcast %101 : vector<1x128xf32> to vector<16x128xf32>
    %103 = arith.addf %99, %102 : vector<16x128xf32>
    %cst_43 = arith.constant 0.000000e+00 : f32
    %104 = vector.broadcast %cst_43 : f32 to vector<16x128xf32>
    %105 = arith.maximumf %103, %104 : vector<16x128xf32>
    %106 = arith.addf %5, %55 : vector<16x128xf32>
    %107 = arith.addf %106, %105 : vector<16x128xf32>
    %c0_44 = arith.constant 0 : index
    %c0_45 = arith.constant 0 : index
    %108 = vector.load %arg4[%c0_44, %c0_45] : memref<16x128xf32, #tpu.memory_space<vmem>>, vector<16x128xf32>
    tpu.vector_store %arg4[%c0_44, %c0_45], %107 {strides = array<i32>} : memref<16x128xf32, #tpu.memory_space<vmem>>, vector<16x128xf32>,
    return
  }
  func.func @transform_0(%arg0: i32) -> (i32, i32) {
    %c0_i32 = arith.constant 0 : i32
    %c0_i32_0 = arith.constant 0 : i32
    return %arg0, %c0_i32 : i32, i32
  }
  func.func @transform_1(%arg0: i32) -> (i32, i32, i32) {
    %c0_i32 = arith.constant 0 : i32
    %c0_i32_0 = arith.constant 0 : i32
    %c0_i32_1 = arith.constant 0 : i32
    %c0_i32_2 = arith.constant 0 : i32
    return %c0_i32, %c0_i32_0, %c0_i32_1 : i32, i32, i32
  }
  func.func @transform_2(%arg0: i32) -> (i32, i32, i32) {
    %c0_i32 = arith.constant 0 : i32
    %c0_i32_0 = arith.constant 0 : i32
    %c0_i32_1 = arith.constant 0 : i32
    %c0_i32_2 = arith.constant 0 : i32
    return %c0_i32, %c0_i32_0, %c0_i32_1 : i32, i32, i32
  }
  func.func @transform_3(%arg0: i32) -> (i32, i32) {
    %c0_i32 = arith.constant 0 : i32
    %c0_i32_0 = arith.constant 0 : i32
    return %arg0, %c0_i32 : i32, i32
  }
}

</mosaic_0001>

<bundles_post_ra>
// kernel: residual_block_forward.1
= control target key start
LH: loop header
LB: loop body
LE: loop exit
PB: predicated region body
PF: predicated region fallthrough
CT: control target
= control target key end

     0   :  { %s1846_s12 = smov 0   ;;  %s2295_s0 = inlined_call_operand.vmem [shape: f32[32,128], index: 0, kind: input, shape index: {}]   ;;  %s2296_s1 = inlined_call_operand.vmem [shape: bf16[4,128,384], index: 1, kind: input, shape index: {}]   ;;  %s2297_s2 = inlined_call_operand.vmem [shape: f32[4,1,128], index: 2, kind: input, shape index: {}]   ;;  %s2298_s3 = inlined_call_operand.vmem [shape: f32[32,128], index: 3, kind: output, shape index: {}]  }
   0x1 LB: > { %s1350_s13 = sadd.s32 4294967295, %s1821_s12   ;;  %p1354_p0 = scmp.ge.s32.totalorder %s1821_s12, 1  ;;  %s1821_s12 = sphi %s1846_s12, %s13_s12  }
   0x2   : > { %p138_p1 = scmp.lt.s32.totalorder %s1821_s12, 3 }
   0x4   : > { %p139_p2 = pnand %p1354_p0, %p138_p1 }
   0x5   : > { %v1687_v0 = vld [vmem:[%s2296_s1 + $0x4] ss:$12 sps:$4 sm:$0xff] (!%p139_p2)   ;;  %v1823_v1 = vmov (!%p139_p2), 0.0   ;;  %v1689_v2 = vld [vmem:[%s2296_s1 + $0x8] ss:$12 sps:$4 sm:$0xff] (!%p139_p2)   ;;  %vm1824_vm0 = vmmov (!%p139_p2), 0   ;;  %v175_v54 = vlaneseq (!%p139_p2) }
   0x6   : > { %142 = sbr.rel (%p139_p2) target bundleno = 952 (0x3b8), region = 32  ;;  %1596 = vmatprep.subr.bf16.mxu1 (!%p139_p2), %v1823_v1  ;;  %1612 = vmatprep.mubr.msk.bf16.mxu1 (!%p139_p2), %vm1824_vm0, %v1823_v1  ;;  %v1690_v3 = vld [vmem:[%s2296_s1] ss:$12 sps:$4 sm:$0xff] (!%p139_p2)   ;;  %v1691_v4 = vld [vmem:[%s2296_s1 + $0x1c] ss:$12 sps:$4 sm:$0xff] (!%p139_p2)   ;;  %v1825_v5 = vmov (!%p139_p2), 0  }
   0x7   : > { %345 = vmatprep.subr.bf16.mxu0 (!%p139_p2), %v1687_v0  ;;  %1597 = vmatpush3.bf16.msra.mxu1 (!%p139_p2), %v1689_v2  ;;  %v1693_v6 = vld [vmem:[%s2296_s1 + $0x20] ss:$12 sps:$4 sm:$0xff] (!%p139_p2)   ;;  %v1694_v7 = vld [vmem:[%s2296_s1 + $0x18] ss:$12 sps:$4 sm:$0xff] (!%p139_p2)   ;;  %v1698_v10 = vld [vmem:[%s2296_s1 + $0x30] ss:$12 sps:$4 sm:$0xff] (!%p139_p2)  }
   0x8   : > { %377 = vmatprep.mubr.bf16.mxu0 (!%p139_p2), %v1825_v5  ;;  %346 = vmatpush1.bf16.msra.mxu0 (!%p139_p2), %v1690_v3  ;;  %v1695_v8 = vld [vmem:[%s2296_s1 + $0x34] ss:$12 sps:$4 sm:$0xff] (!%p139_p2)   ;;  %v1697_v9 = vld [vmem:[%s2296_s1 + $0x38] ss:$12 sps:$4 sm:$0xff] (!%p139_p2)   ;;  %s1355_s7 = sshll.u32 (!%p139_p2), %s1350_s13, 1  ;;  %v2040_v55 = vshrl.u32 (!%p139_p2), %v175_v54, 7 }
   0x9   : > { %1598 = vmatprep.subr.bf16.mxu1 (!%p139_p2), %v1823_v1  ;;  %347 = vmatprep.subr.bf16.mxu0 (!%p139_p2), %v1691_v4  ;;  %v1699_v11 = vld [vmem:[%s2296_s1 + $0x4c] ss:$12 sps:$4 sm:$0xff] (!%p139_p2)   ;;  %v1701_v12 = vld [vmem:[%s2296_s1 + $0x50] ss:$12 sps:$4 sm:$0xff] (!%p139_p2)   ;;  %v1702_v13 = vld [vmem:[%s2296_s1 + $0x48] ss:$12 sps:$4 sm:$0xff] (!%p139_p2)  }
   0xa   : > { %p163_p3 = scmp.lt.s32.totalorder (!%p139_p2), %s1355_s7, 3  ;;  %v1703_v14 = vld [vmem:[%s2296_s1 + $0x64] ss:$12 sps:$4 sm:$0xff] (!%p139_p2)   ;;  %v1705_v15 = vld [vmem:[%s2296_s1 + $0x68] ss:$12 sps:$4 sm:$0xff] (!%p139_p2)   ;;  %v2043_v56 = vadd.s32 (!%p139_p2), 8, %v2040_v55 }
   0xb   : > { %1599 = vmatpush3.bf16.msra.mxu1 (!%p139_p2), %v1693_v6  ;;  %v1706_v16 = vld [vmem:[%s2296_s1 + $0x60] ss:$12 sps:$4 sm:$0xff] (!%p139_p2)   ;;  %v1707_v17 = vld [vmem:[%s2296_s1 + $0x7c] ss:$12 sps:$4 sm:$0xff] (!%p139_p2)   ;;  %v1710_v19 = vld [vmem:[%s2296_s1 + $0x78] ss:$12 sps:$4 sm:$0xff] (!%p139_p2)  }
   0xc   : > { %348 = vmatpush1.bf16.msra.mxu0 (!%p139_p2), %v1694_v7  ;;  %1600 = vmatprep.subr.bf16.mxu1 (!%p139_p2), %v1823_v1  ;;  %v1709_v18 = vld [vmem:[%s2296_s1 + $0x80] ss:$12 sps:$4 sm:$0xff] (!%p139_p2)   ;;  %v1713_v21 = vld [vmem:[%s2296_s1 + $0x98] ss:$12 sps:$4 sm:$0xff] (!%p139_p2)   ;;  %v1714_v22 = vld [vmem:[%s2296_s1 + $0x90] ss:$12 sps:$4 sm:$0xff] (!%p139_p2)  }
   0xd   : > { %349 = vmatprep.subr.bf16.mxu0 %v1695_v8  ;;  %s2300_s7 = smov (!%p163_p3, %s1355_s7), 3  ;;  %v1711_v20 = vld [vmem:[%s2296_s1 + $0x94] ss:$12 sps:$4 sm:$0xff]   ;;  %v1715_v23 = vld [vmem:[%s2296_s1 + $0xac] ss:$12 sps:$4 sm:$0xff]   ;;  %vm442_vm1 = vcmp.lt.s32.totalorder %v2040_v55, 7 }
   0xe   : > { %s1356_s27 = sshll.u32 %s2300_s7, 3  ;;  %v1717_v24 = vld [vmem:[%s2296_s1 + $0xb0] ss:$12 sps:$4 sm:$0xff]   ;;  %v1718_v25 = vld [vmem:[%s2296_s1 + $0xa8] ss:$12 sps:$4 sm:$0xff]   ;;  %vm431_vm2 = vcmp.lt.s32.totalorder %v2040_v55, 1 }
   0xf   : > { %1601 = vmatpush3.bf16.msra.mxu1 %v1697_v9  ;;  %s166_s10 = scalar_lea.vmem %s2295_s0, %s1356_s27  ;;  %v1721_v28 = vld [vmem:[%s2296_s1 + $0xc4] ss:$12 sps:$4 sm:$0xff]   ;;  %v1722_v29 = vld [vmem:[%s2296_s1 + $0xc8] ss:$12 sps:$4 sm:$0xff]   ;;  %v1719_v31 = vld [vmem:[%s2296_s1 + $0xc0] ss:$12 sps:$4 sm:$0xff]   ;;  %s172_s26 = scalar_lea.vmem %s2298_s3, %s1356_s27 }
  0x10   : > { %350 = vmatpush1.bf16.msra.mxu0 %v1698_v10  ;;  %1602 = vmatprep.subr.bf16.mxu1 %v1823_v1  ;;  %v1946_v26 = vld [vmem:[%s166_s10] sm:$0xff]  ;;  %v1948_v27 = vld [vmem:[%s166_s10 + $0x8] sm:$0xff]  ;;  %v1727_v37 = vld [vmem:[%s2296_s1 + $0xf0] ss:$12 sps:$4 sm:$0xff]   ;;  %vm181_vm3 = vcmp.eq.s32.totalorder %v2043_v56, 15  ;;  %vm178_vm4 = vcmp.eq.s32.totalorder %v2040_v55, 0 }
  0x11   : > { %351 = vmatprep.subr.bf16.mxu0 %v1699_v11  ;;  %v184_v30 = vpack.c.bf16 %v1948_v27, %v1946_v26  ;;  %v1725_v32 = vld [vmem:[%s2296_s1 + $0xdc] ss:$12 sps:$4 sm:$0xff]   ;;  %v1726_v33 = vld [vmem:[%s2296_s1 + $0xe0] ss:$12 sps:$4 sm:$0xff]   ;;  %v1723_v34 = vld [vmem:[%s2296_s1 + $0xd8] ss:$12 sps:$4 sm:$0xff]  }
  0x12   : > { %v1729_v35 = vld [vmem:[%s2296_s1 + $0xf4] ss:$12 sps:$4 sm:$0xff]   ;;  %v1730_v36 = vld [vmem:[%s2296_s1 + $0xf8] ss:$12 sps:$4 sm:$0xff]   ;;  %v1734_v39 = vld [vmem:[%s2296_s1 + $0x110] ss:$12 sps:$4 sm:$0xff]  }
  0x13   : > { %1603 = vmatpush3.bf16.msra.mxu1 %v1701_v12  ;;  %v1733_v38 = vld [vmem:[%s2296_s1 + $0x10c] ss:$12 sps:$4 sm:$0xff]   ;;  %v1731_v40 = vld [vmem:[%s2296_s1 + $0x108] ss:$12 sps:$4 sm:$0xff]   ;;  %v1737_v41 = vld [vmem:[%s2296_s1 + $0x124] ss:$12 sps:$4 sm:$0xff]  }
  0x14   : > { %352 = vmatpush1.bf16.msra.mxu0 %v1702_v13  ;;  %1604 = vmatprep.subr.bf16.mxu1 %v1823_v1  ;;  %v1735_v42 = vld [vmem:[%s2296_s1 + $0x120] ss:$12 sps:$4 sm:$0xff]   ;;  %v1738_v43 = vld [vmem:[%s2296_s1 + $0x128] ss:$12 sps:$4 sm:$0xff]   ;;  %v1739_v45 = vld [vmem:[%s2296_s1 + $0x138] ss:$12 sps:$4 sm:$0xff]  }
  0x15   : > { %353 = vmatprep.subr.bf16.mxu0 %v1703_v14  ;;  %v1741_v44 = vld [vmem:[%s2296_s1 + $0x13c] ss:$12 sps:$4 sm:$0xff]   ;;  %v1742_v46 = vld [vmem:[%s2296_s1 + $0x140] ss:$12 sps:$4 sm:$0xff]   ;;  %v1746_v49 = vld [vmem:[%s2296_s1 + $0x158] ss:$12 sps:$4 sm:$0xff]  }
  0x16   : > { %v1745_v47 = vld [vmem:[%s2296_s1 + $0x154] ss:$12 sps:$4 sm:$0xff]   ;;  %v1743_v48 = vld [vmem:[%s2296_s1 + $0x150] ss:$12 sps:$4 sm:$0xff]   ;;  %v1749_v50 = vld [vmem:[%s2296_s1 + $0x16c] ss:$12 sps:$4 sm:$0xff]  }
  0x17   : > { %1605 = vmatpush3.bf16.msra.mxu1 %v1705_v15  ;;  %v1747_v51 = vld [vmem:[%s2296_s1 + $0x168] ss:$12 sps:$4 sm:$0xff]   ;;  %v1750_v52 = vld [vmem:[%s2296_s1 + $0x170] ss:$12 sps:$4 sm:$0xff]   ;;  %v1383_v15 = vld [vmem:[%s2297_s2] ss:$0 sm:$0xff] }
  0x18   : > { %354 = vmatpush1.bf16.msra.mxu0 %v1706_v16  ;;  %1606 = vmatprep.subr.bf16.mxu1 %v1823_v1  ;;  %v1753_v53 = vld [vmem:[%s2296_s1 + $0x184] ss:$12 sps:$4 sm:$0xff]  }
  0x19   : > { %355 = vmatprep.subr.bf16.mxu0 %v1707_v17 }
  0x1b   : > { %1607 = vmatpush3.bf16.msra.mxu1 %v1709_v18 }
  0x1c   : > { %356 = vmatpush1.bf16.msra.mxu0 %v1710_v19  ;;  %1608 = vmatprep.subr.bf16.mxu1 %v1823_v1 }
  0x1d   : > { %357 = vmatprep.subr.bf16.mxu0 %v1711_v20 }
  0x1f   : > { %1609 = vmatpush3.bf16.msra.mxu1 %v1713_v21 }
  0x20   : > { %358 = vmatpush1.bf16.msra.mxu0 %v1714_v22  ;;  %1610 = vmatprep.subr.bf16.mxu1 %v1823_v1  ;;  %v1751_v22 = vld [vmem:[%s2296_s1 + $0x180] ss:$12 sps:$4 sm:$0xff]  }
  0x21   : > { %359 = vmatprep.subr.bf16.mxu0 %v1715_v23  ;;  %v1754_v23 = vld [vmem:[%s2296_s1 + $0x188] ss:$12 sps:$4 sm:$0xff]  }
  0x23   : > { %1611 = vmatpush3.bf16.msra.mxu1 %v1717_v24 }
  0x24   : > { %360 = vmatpush1.bf16.msra.mxu0 %v1718_v25  ;;  %1616 = vmatprep.subr.bf16.mxu1 %v1823_v1  ;;  %v1757_v25 = vld [vmem:[%s2296_s1 + $0x19c] ss:$12 sps:$4 sm:$0xff]  }
  0x25   : > { %628 = vmatprep.subr.bf16.mxu0 %v1721_v28  ;;  %v1755_v28 = vld [vmem:[%s2296_s1 + $0x198] ss:$12 sps:$4 sm:$0xff]  }
  0x26   : > { %1613 = vmatmul.mubr.bf16.vlgmr.msra.gmra.mrb[0].mxu1 %v184_v30 }
  0x27   : > { %378 = vmatmul.mubr.bf16.vlgmr.msra.gmra.mrb[0].mxu0 %v184_v30  ;;  %1617 = vmatpush3.bf16.msra.mxu1 %v1722_v29  ;;  %v1758_v29 = vld [vmem:[%s2296_s1 + $0x1a0] ss:$12 sps:$4 sm:$0xff]  }
  0x28   : > { %629 = vmatpush1.bf16.msra.mxu0 %v1719_v31  ;;  %1618 = vmatprep.subr.bf16.mxu1 %v1823_v1  ;;  %v1761_v30 = vld [vmem:[%s2296_s1 + $0x1b4] ss:$12 sps:$4 sm:$0xff]   ;;  %v1759_v31 = vld [vmem:[%s2296_s1 + $0x1b0] ss:$12 sps:$4 sm:$0xff]  }
  0x29   : > { %630 = vmatprep.subr.bf16.mxu0 %v1725_v32  ;;  %660 = vmatprep.mubr.bf16.mxu0 %v1825_v5  ;;  %v1762_v32 = vld [vmem:[%s2296_s1 + $0x1b8] ss:$12 sps:$4 sm:$0xff]  }
  0x2a   : > { %1632 = vmatprep.mubr.msk.bf16.mxu1 %vm1824_vm0, %v1823_v1 }
  0x2b   : > { %1619 = vmatpush3.bf16.msra.mxu1 %v1726_v33  ;;  %v1765_v33 = vld [vmem:[%s2296_s1 + $0x1cc] ss:$12 sps:$4 sm:$0xff]  }
  0x2c   : > { %631 = vmatpush1.bf16.msra.mxu0 %v1723_v34  ;;  %1620 = vmatprep.subr.bf16.mxu1 %v1823_v1  ;;  %v1763_v34 = vld [vmem:[%s2296_s1 + $0x1c8] ss:$12 sps:$4 sm:$0xff]  }
  0x2d   : > { %632 = vmatprep.subr.bf16.mxu0 %v1729_v35  ;;  %v1766_v35 = vld [vmem:[%s2296_s1 + $0x1d0] ss:$12 sps:$4 sm:$0xff]  }
  0x2f   : > { %1621 = vmatpush3.bf16.msra.mxu1 %v1730_v36  ;;  %v1769_v36 = vld [vmem:[%s2296_s1 + $0x1e4] ss:$12 sps:$4 sm:$0xff]  }
  0x30   : > { %633 = vmatpush1.bf16.msra.mxu0 %v1727_v37  ;;  %1622 = vmatprep.subr.bf16.mxu1 %v1823_v1  ;;  %v1767_v37 = vld [vmem:[%s2296_s1 + $0x1e0] ss:$12 sps:$4 sm:$0xff]  }
  0x31   : > { %634 = vmatprep.subr.bf16.mxu0 %v1733_v38  ;;  %v1770_v38 = vld [vmem:[%s2296_s1 + $0x1e8] ss:$12 sps:$4 sm:$0xff]  }
  0x33   : > { %1623 = vmatpush3.bf16.msra.mxu1 %v1734_v39  ;;  %v1773_v39 = vld [vmem:[%s2296_s1 + $0x1fc] ss:$12 sps:$4 sm:$0xff]  }
  0x34   : > { %635 = vmatpush1.bf16.msra.mxu0 %v1731_v40  ;;  %1624 = vmatprep.subr.bf16.mxu1 %v1823_v1  ;;  %v1771_v40 = vld [vmem:[%s2296_s1 + $0x1f8] ss:$12 sps:$4 sm:$0xff]  }
  0x35   : > { %636 = vmatprep.subr.bf16.mxu0 %v1737_v41  ;;  %v1774_v41 = vld [vmem:[%s2296_s1 + $0x200] ss:$12 sps:$4 sm:$0xff]  }
  0x37   : > { %1625 = vmatpush3.bf16.msra.mxu1 %v1738_v43  ;;  %v1775_v43 = vld [vmem:[%s2296_s1 + $0x210] ss:$12 sps:$4 sm:$0xff]  }
  0x38   : > { %637 = vmatpush1.bf16.msra.mxu0 %v1735_v42  ;;  %1626 = vmatprep.subr.bf16.mxu1 %v1823_v1  ;;  %v1777_v42 = vld [vmem:[%s2296_s1 + $0x214] ss:$12 sps:$4 sm:$0xff]  }
  0x39   : > { %638 = vmatprep.subr.bf16.mxu0 %v1741_v44  ;;  %v1778_v44 = vld [vmem:[%s2296_s1 + $0x218] ss:$12 sps:$4 sm:$0xff]  }
  0x3b   : > { %1627 = vmatpush3.bf16.msra.mxu1 %v1742_v46  ;;  %v1779_v46 = vld [vmem:[%s2296_s1 + $0x228] ss:$12 sps:$4 sm:$0xff]  }
  0x3c   : > { %639 = vmatpush1.bf16.msra.mxu0 %v1739_v45  ;;  %1628 = vmatprep.subr.bf16.mxu1 %v1823_v1  ;;  %v1781_v45 = vld [vmem:[%s2296_s1 + $0x22c] ss:$12 sps:$4 sm:$0xff]  }
  0x3d   : > { %640 = vmatprep.subr.bf16.mxu0 %v1745_v47  ;;  %v1782_v47 = vld [vmem:[%s2296_s1 + $0x230] ss:$12 sps:$4 sm:$0xff]  }
  0x3f   : > { %1629 = vmatpush3.bf16.msra.mxu1 %v1746_v49 }
  0x40   : > { %641 = vmatpush1.bf16.msra.mxu0 %v1743_v48  ;;  %1630 = vmatprep.subr.bf16.mxu1 %v1823_v1  ;;  %v1785_v48 = vld [vmem:[%s2296_s1 + $0x244] ss:$12 sps:$4 sm:$0xff]  }
  0x41   : > { %642 = vmatprep.subr.bf16.mxu0 %v1749_v50 }
  0x43   : > { %1631 = vmatpush3.bf16.msra.mxu1 %v1750_v52 }
  0x44   : > { %643 = vmatpush1.bf16.msra.mxu0 %v1747_v51  ;;  %1636 = vmatprep.subr.bf16.mxu1 %v1823_v1 }
  0x45   : > { %902 = vmatprep.subr.bf16.mxu0 %v1753_v53 }
  0xf9   : > { %v422_v57 = vpop.f32.mrb[0].mxu1 }
  0xfa   : > { %v440_v58 = vrot.slane %v422_v57, 1  ;;  %v379_v59 = vpop.f32.mrb[0].mxu0  ;;  %v1614_v60 = vpop.f32.mrb[1].mxu1 }
  0xfb   : > { %v381_v61 = vpop.f32.mrb[1].mxu0  ;;  %v425_v62 = vpop.f32.mrb[2].mxu1  ;;  %v429_v3 = vrot.slane %v379_v59, 7 }
  0xfc   : > { %v441_v63 = vrot.slane %v425_v62, 1  ;;  %v383_v0 = vpop.f32.mrb[2].mxu0  ;;  %v1615_v2 = vpop.f32.mrb[3].mxu1 }
  0xfd   : > { %v430_v4 = vrot.slane %v383_v0, 7  ;;  %v385_v6 = vpop.f32.mrb[3].mxu0 }
  0xfe   : > { %v443_v7 = vsel %vm442_vm1, %v440_v58, %v441_v63  ;;  %v444_v8 = vsel %vm442_vm1, %v441_v63, %v440_v58 }
  0xff   : > { %v433_v9 = vsel %vm431_vm2, %v430_v4, %v429_v3  ;;  %v432_v10 = vsel %vm431_vm2, %v429_v3, %v430_v4  ;;  %v450_v11 = vsel %vm181_vm3, 0.0, %v444_v8 }
 0x100   : > { %v438_v12 = vsel %vm178_vm4, 0.0, %v433_v9  ;;  %v452_v13 = vadd.f32 %v432_v10, %v385_v6  ;;  %v1441_v9 = vld [vmem:[%s2297_s2 + $0x1] ss:$0 sm:$0xff] }
 0x101   : > { %v451_v14 = vadd.f32 %v438_v12, %v381_v61 }
 0x102   : > { %v454_v16 = vadd.f32 %v452_v13, %v450_v11 }
 0x103   : > { %v453_v17 = vadd.f32 %v451_v14, %v443_v7 }
 0x104   : > { %v463_v18 = vadd.f32 %v1383_v15, %v454_v16  ;;  %v1783_v16 = vld [vmem:[%s2296_s1 + $0x240] ss:$12 sps:$4 sm:$0xff]  }
 0x105   : > { %v462_v19 = vadd.f32 %v1383_v15, %v453_v17  ;;  %v1786_v17 = vld [vmem:[%s2296_s1 + $0x248] ss:$12 sps:$4 sm:$0xff]  }
 0x106   : > { %v465_v20 = vmax.f32 %v463_v18, 0.0 }
 0x107   : > { %v464_v21 = vmax.f32 %v462_v19, 0.0  ;;  %v1789_v19 = vld [vmem:[%s2296_s1 + $0x25c] ss:$12 sps:$4 sm:$0xff]  }
 0x109   : > { %v466_v24 = vpack.c.bf16 %v465_v20, %v464_v21  ;;  %v1787_v20 = vld [vmem:[%s2296_s1 + $0x258] ss:$12 sps:$4 sm:$0xff]   ;;  %v1790_v21 = vld [vmem:[%s2296_s1 + $0x260] ss:$12 sps:$4 sm:$0xff]  }
 0x10b   : > { %661 = vmatmul.mubr.bf16.vlgmr.msra.gmra.mrb[4].mxu0 %v466_v24  ;;  %1633 = vmatmul.mubr.bf16.vlgmr.msra.gmra.mrb[4].mxu1 %v466_v24  ;;  %v1794_v24 = vld [vmem:[%s2296_s1 + $0x278] ss:$12 sps:$4 sm:$0xff]  }
 0x10c   : > { %903 = vmatpush1.bf16.msra.mxu0 %v1751_v22  ;;  %1637 = vmatpush3.bf16.msra.mxu1 %v1754_v23  ;;  %v1793_v22 = vld [vmem:[%s2296_s1 + $0x274] ss:$12 sps:$4 sm:$0xff]   ;;  %v1791_v23 = vld [vmem:[%s2296_s1 + $0x270] ss:$12 sps:$4 sm:$0xff]  }
 0x10d   : > { %904 = vmatprep.subr.bf16.mxu0 %v1757_v25  ;;  %1638 = vmatprep.subr.bf16.mxu1 %v1823_v1  ;;  %v1795_v25 = vld [vmem:[%s2296_s1 + $0x288] ss:$12 sps:$4 sm:$0xff]  }
 0x10e   : > { %934 = vmatprep.mubr.bf16.mxu0 %v1825_v5  ;;  %1652 = vmatprep.mubr.msk.bf16.mxu1 %vm1824_vm0, %v1823_v1 }
 0x110   : > { %905 = vmatpush1.bf16.msra.mxu0 %v1755_v28  ;;  %1639 = vmatpush3.bf16.msra.mxu1 %v1758_v29  ;;  %v1798_v28 = vld [vmem:[%s2296_s1 + $0x290] ss:$12 sps:$4 sm:$0xff]  }
 0x111   : > { %906 = vmatprep.subr.bf16.mxu0 %v1761_v30  ;;  %1640 = vmatprep.subr.bf16.mxu1 %v1823_v1  ;;  %v1801_v29 = vld [vmem:[%s2296_s1 + $0x2a4] ss:$12 sps:$4 sm:$0xff]   ;;  %v1799_v30 = vld [vmem:[%s2296_s1 + $0x2a0] ss:$12 sps:$4 sm:$0xff]  }
 0x114   : > { %907 = vmatpush1.bf16.msra.mxu0 %v1759_v31  ;;  %1641 = vmatpush3.bf16.msra.mxu1 %v1762_v32  ;;  %v1802_v31 = vld [vmem:[%s2296_s1 + $0x2a8] ss:$12 sps:$4 sm:$0xff]  }
 0x115   : > { %908 = vmatprep.subr.bf16.mxu0 %v1765_v33  ;;  %1642 = vmatprep.subr.bf16.mxu1 %v1823_v1  ;;  %v1805_v32 = vld [vmem:[%s2296_s1 + $0x2bc] ss:$12 sps:$4 sm:$0xff]   ;;  %v1803_v33 = vld [vmem:[%s2296_s1 + $0x2b8] ss:$12 sps:$4 sm:$0xff]  }
 0x118   : > { %909 = vmatpush1.bf16.msra.mxu0 %v1763_v34  ;;  %1643 = vmatpush3.bf16.msra.mxu1 %v1766_v35  ;;  %v1806_v34 = vld [vmem:[%s2296_s1 + $0x2c0] ss:$12 sps:$4 sm:$0xff]  }
 0x119   : > { %1644 = vmatprep.subr.bf16.mxu1 %v1823_v1  ;;  %910 = vmatprep.subr.bf16.mxu0 %v1769_v36  ;;  %v1809_v35 = vld [vmem:[%s2296_s1 + $0x2d4] ss:$12 sps:$4 sm:$0xff]   ;;  %v1807_v36 = vld [vmem:[%s2296_s1 + $0x2d0] ss:$12 sps:$4 sm:$0xff]  }
 0x11c   : > { %911 = vmatpush1.bf16.msra.mxu0 %v1767_v37  ;;  %1645 = vmatpush3.bf16.msra.mxu1 %v1770_v38  ;;  %v1810_v37 = vld [vmem:[%s2296_s1 + $0x2d8] ss:$12 sps:$4 sm:$0xff]  }
 0x11d   : > { %1646 = vmatprep.subr.bf16.mxu1 %v1823_v1  ;;  %912 = vmatprep.subr.bf16.mxu0 %v1773_v39  ;;  %v1813_v38 = vld [vmem:[%s2296_s1 + $0x2ec] ss:$12 sps:$4 sm:$0xff]   ;;  %v1811_v39 = vld [vmem:[%s2296_s1 + $0x2e8] ss:$12 sps:$4 sm:$0xff]  }
 0x120   : > { %913 = vmatpush1.bf16.msra.mxu0 %v1771_v40  ;;  %1647 = vmatpush3.bf16.msra.mxu1 %v1774_v41  ;;  %v1814_v40 = vld [vmem:[%s2296_s1 + $0x2f0] ss:$12 sps:$4 sm:$0xff]  }
 0x121   : > { %1648 = vmatprep.subr.bf16.mxu1 %v1823_v1  ;;  %914 = vmatprep.subr.bf16.mxu0 %v1777_v42 }
 0x124   : > { %915 = vmatpush1.bf16.msra.mxu0 %v1775_v43  ;;  %1649 = vmatpush3.bf16.msra.mxu1 %v1778_v44 }
 0x125   : > { %1650 = vmatprep.subr.bf16.mxu1 %v1823_v1  ;;  %916 = vmatprep.subr.bf16.mxu0 %v1781_v45 }
 0x128   : > { %917 = vmatpush1.bf16.msra.mxu0 %v1779_v46  ;;  %1651 = vmatpush3.bf16.msra.mxu1 %v1782_v47 }
 0x129   : > { %1656 = vmatprep.subr.bf16.mxu1 %v1823_v1  ;;  %1176 = vmatprep.subr.bf16.mxu0 %v1785_v48 }
 0x1de   : > { %v662_v49 = vpop.f32.mrb[4].mxu0  ;;  %v705_v50 = vpop.f32.mrb[4].mxu1 }
 0x1df   : > { %v664_v51 = vpop.f32.mrb[5].mxu0  ;;  %v1634_v52 = vpop.f32.mrb[5].mxu1  ;;  %v712_v57 = vrot.slane %v662_v49, 7  ;;  %v718_v58 = vrot.slane %v705_v50, 1 }
 0x1e0   : > { %v666_v53 = vpop.f32.mrb[6].mxu0  ;;  %v708_v54 = vpop.f32.mrb[6].mxu1 }
 0x1e1   : > { %v713_v59 = vrot.slane %v666_v53, 7  ;;  %v719_v60 = vrot.slane %v708_v54, 1  ;;  %v668_v61 = vpop.f32.mrb[7].mxu0  ;;  %v1635_v62 = vpop.f32.mrb[7].mxu1 }
 0x1e2   : > { %v1499_v62 = vld [vmem:[%s2297_s2 + $0x2] ss:$0 sm:$0xff] }
 0x1e3   : > { %v715_v63 = vsel %vm431_vm2, %v713_v59, %v712_v57  ;;  %v720_v0 = vsel %vm442_vm1, %v718_v58, %v719_v60  ;;  %v714_v2 = vsel %vm431_vm2, %v712_v57, %v713_v59  ;;  %v721_v3 = vsel %vm442_vm1, %v719_v60, %v718_v58 }
 0x1e4   : > { %v716_v4 = vsel %vm178_vm4, 0.0, %v715_v63  ;;  %v723_v6 = vsel %vm181_vm3, 0.0, %v721_v3  ;;  %v725_v7 = vadd.f32 %v714_v2, %v668_v61 }
 0x1e5   : > { %v724_v8 = vadd.f32 %v716_v4, %v664_v51 }
 0x1e6   : > { %v727_v10 = vadd.f32 %v725_v7, %v723_v6 }
 0x1e7   : > { %v726_v11 = vadd.f32 %v724_v8, %v720_v0 }
 0x1e8   : > { %v2162_v12 = vadd.f32 %v1441_v9, %v727_v10 }
 0x1e9   : > { %v2164_v13 = vadd.f32 %v1441_v9, %v726_v11 }
 0x1ea   : > { %v739_v14 = vmax.f32 %v2162_v12, 0.0 }
 0x1eb   : > { %v738_v15 = vmax.f32 %v2164_v13, 0.0 }
 0x1ed   : > { %v740_v18 = vpack.c.bf16 %v739_v14, %v738_v15  ;;  %v1288_v55 = vadd.f32 %v738_v15, %v1946_v26 }
 0x1ef   : > { %935 = vmatmul.mubr.bf16.vlgmr.msra.gmra.mrb[8].mxu0 %v740_v18  ;;  %1653 = vmatmul.mubr.bf16.vlgmr.msra.gmra.mrb[8].mxu1 %v740_v18 }
 0x1f0   : > { %1177 = vmatpush1.bf16.msra.mxu0 %v1783_v16  ;;  %1657 = vmatpush3.bf16.msra.mxu1 %v1786_v17 }
 0x1f1   : > { %1178 = vmatprep.subr.bf16.mxu0 %v1789_v19  ;;  %1658 = vmatprep.subr.bf16.mxu1 %v1823_v1 }
 0x1f2   : > { %1208 = vmatprep.mubr.bf16.mxu0 %v1825_v5  ;;  %1672 = vmatprep.mubr.msk.bf16.mxu1 %vm1824_vm0, %v1823_v1  ;;  %v1797_v5 = vld [vmem:[%s2296_s1 + $0x28c] ss:$12 sps:$4 sm:$0xff]  }
 0x1f4   : > { %1179 = vmatpush1.bf16.msra.mxu0 %v1787_v20  ;;  %1659 = vmatpush3.bf16.msra.mxu1 %v1790_v21 }
 0x1f5   : > { %1180 = vmatprep.subr.bf16.mxu0 %v1793_v22  ;;  %1660 = vmatprep.subr.bf16.mxu1 %v1823_v1 }
 0x1f8   : > { %1181 = vmatpush1.bf16.msra.mxu0 %v1791_v23  ;;  %1661 = vmatpush3.bf16.msra.mxu1 %v1794_v24 }
 0x1f9   : > { %1182 = vmatprep.subr.bf16.mxu0 %v1797_v5  ;;  %1662 = vmatprep.subr.bf16.mxu1 %v1823_v1 }
 0x1fc   : > { %1183 = vmatpush1.bf16.msra.mxu0 %v1795_v25  ;;  %1663 = vmatpush3.bf16.msra.mxu1 %v1798_v28 }
 0x1fd   : > { %1664 = vmatprep.subr.bf16.mxu1 %v1823_v1  ;;  %1184 = vmatprep.subr.bf16.mxu0 %v1801_v29 }
 0x200   : > { %1185 = vmatpush1.bf16.msra.mxu0 %v1799_v30  ;;  %1665 = vmatpush3.bf16.msra.mxu1 %v1802_v31 }
 0x201   : > { %1666 = vmatprep.subr.bf16.mxu1 %v1823_v1  ;;  %1186 = vmatprep.subr.bf16.mxu0 %v1805_v32 }
 0x204   : > { %1187 = vmatpush1.bf16.msra.mxu0 %v1803_v33  ;;  %1667 = vmatpush3.bf16.msra.mxu1 %v1806_v34  ;;  %v1557_v33 = vld [vmem:[%s2297_s2 + $0x3] ss:$0 sm:$0xff] }
 0x205   : > { %1668 = vmatprep.subr.bf16.mxu1 %v1823_v1  ;;  %1188 = vmatprep.subr.bf16.mxu0 %v1809_v35 }
 0x208   : > { %1189 = vmatpush1.bf16.msra.mxu0 %v1807_v36  ;;  %1669 = vmatpush3.bf16.msra.mxu1 %v1810_v37 }
 0x209   : > { %1670 = vmatprep.subr.bf16.mxu1 %v1823_v1  ;;  %1190 = vmatprep.subr.bf16.mxu0 %v1813_v38  ;;  %v1289_v38 = vadd.f32 %v739_v14, %v1948_v27 }
 0x20c   : > { %1191 = vmatpush1.bf16.msra.mxu0 %v1811_v39  ;;  %1671 = vmatpush3.bf16.msra.mxu1 %v1814_v40 }
 0x2c2   : > { %v936_v41 = vpop.f32.mrb[8].mxu0  ;;  %v979_v42 = vpop.f32.mrb[8].mxu1 }
 0x2c3   : > { %v938_v43 = vpop.f32.mrb[9].mxu0  ;;  %v1654_v44 = vpop.f32.mrb[9].mxu1  ;;  %v986_v47 = vrot.slane %v936_v41, 7  ;;  %v992_v48 = vrot.slane %v979_v42, 1 }
 0x2c4   : > { %v940_v45 = vpop.f32.mrb[10].mxu0  ;;  %v982_v46 = vpop.f32.mrb[10].mxu1 }
 0x2c5   : > { %v987_v1 = vrot.slane %v940_v45, 7  ;;  %v993_v49 = vrot.slane %v982_v46, 1  ;;  %v942_v50 = vpop.f32.mrb[11].mxu0  ;;  %v1655_v51 = vpop.f32.mrb[11].mxu1 }
 0x2c7   : > { %v989_v52 = vsel %vm431_vm2, %v987_v1, %v986_v47  ;;  %v994_v53 = vsel %vm442_vm1, %v992_v48, %v993_v49  ;;  %v988_v54 = vsel %vm431_vm2, %v986_v47, %v987_v1  ;;  %v995_v57 = vsel %vm442_vm1, %v993_v49, %v992_v48 }
 0x2c8   : > { %v990_v58 = vsel %vm178_vm4, 0.0, %v989_v52  ;;  %v997_v59 = vsel %vm181_vm3, 0.0, %v995_v57  ;;  %v999_v60 = vadd.f32 %v988_v54, %v942_v50 }
 0x2c9   : > { %v998_v61 = vadd.f32 %v990_v58, %v938_v43 }
 0x2ca   : > { %v1001_v63 = vadd.f32 %v999_v60, %v997_v59 }
 0x2cb   : > { %v1000_v0 = vadd.f32 %v998_v61, %v994_v53 }
 0x2cc   : > { %v1011_v2 = vadd.f32 %v1499_v62, %v1001_v63 }
 0x2cd   : > { %v1010_v3 = vadd.f32 %v1499_v62, %v1000_v0 }
 0x2ce   : > { %v1013_v4 = vmax.f32 %v1011_v2, 0.0 }
 0x2cf   : > { %v1012_v6 = vmax.f32 %v1010_v3, 0.0 }
 0x2d1   : > { %v1014_v7 = vpack.c.bf16 %v1013_v4, %v1012_v6 }
 0x2d3   : > { %1209 = vmatmul.mubr.bf16.vlgmr.msra.gmra.mrb[12].mxu0 %v1014_v7  ;;  %1673 = vmatmul.mubr.bf16.vlgmr.msra.gmra.mrb[12].mxu1 %v1014_v7 }
 0x3a6   : > { %v1210_v8 = vpop.f32.mrb[12].mxu0  ;;  %v1253_v9 = vpop.f32.mrb[12].mxu1 }
 0x3a7   : > { %v1212_v10 = vpop.f32.mrb[13].mxu0  ;;  %v1674_v11 = vpop.f32.mrb[13].mxu1  ;;  %v1260_v18 = vrot.slane %v1210_v8, 7  ;;  %v1266_v19 = vrot.slane %v1253_v9, 1 }
 0x3a8   : > { %v1214_v16 = vpop.f32.mrb[14].mxu0  ;;  %v1256_v17 = vpop.f32.mrb[14].mxu1 }
 0x3a9   : > { %v1261_v20 = vrot.slane %v1214_v16, 7  ;;  %v1267_v21 = vrot.slane %v1256_v17, 1  ;;  %v1216_v22 = vpop.f32.mrb[15].mxu0  ;;  %v1675_v23 = vpop.f32.mrb[15].mxu1 }
 0x3ab   : > { %v1263_v24 = vsel %vm431_vm2, %v1261_v20, %v1260_v18  ;;  %v1268_v5 = vsel %vm442_vm1, %v1266_v19, %v1267_v21  ;;  %v1262_v25 = vsel %vm431_vm2, %v1260_v18, %v1261_v20  ;;  %v1269_v28 = vsel %vm442_vm1, %v1267_v21, %v1266_v19 }
 0x3ac   : > { %v1264_v29 = vsel %vm178_vm4, 0.0, %v1263_v24  ;;  %v1271_v30 = vsel %vm181_vm3, 0.0, %v1269_v28  ;;  %v1273_v31 = vadd.f32 %v1262_v25, %v1216_v22 }
 0x3ad   : > { %v1272_v32 = vadd.f32 %v1264_v29, %v1212_v10 }
 0x3ae   : > { %v1275_v34 = vadd.f32 %v1273_v31, %v1271_v30 }
 0x3af   : > { %v1274_v35 = vadd.f32 %v1272_v32, %v1268_v5 }
 0x3b0   : > { %v1285_v36 = vadd.f32 %v1557_v33, %v1275_v34 }
 0x3b1   : > { %v1284_v37 = vadd.f32 %v1557_v33, %v1274_v35 }
 0x3b2   : > { %v1287_v39 = vmax.f32 %v1285_v36, 0.0 }
 0x3b3   : > { %v1286_v56 = vmax.f32 %v1284_v37, 0.0 }
 0x3b4   : > { %v1291_v40 = vadd.f32 %v1289_v38, %v1287_v39 }
 0x3b5   : > { %v1290_v41 = vadd.f32 %v1288_v55, %v1286_v56 }
 0x3b6   : > { %1293 = vst [vmem:[%s172_s26 + $0x8] sm:$0xff] %v1291_v40 }
 0x3b7   : > { %1292 = vst [vmem:[%s172_s26] sm:$0xff] %v1290_v41 }
 0x3b8 PF: > { %s13_s12 = sadd.s32 1, %s1821_s12  }
 0x3b9   : > { %p10_p4 = scmp.ge.s32.totalorder %s13_s12, 4  }
 0x3bb   :  { %12 = sbr.rel (!%p10_p4) target bundleno = 1 (0x1), region = 68 }

</bundles_post_ra>
